<compile_context>
chip_gen: v7x
topology: tpu7x:2x2x1
jax: 0.10.0
libtpu: 0.0.40
codegen_flags: <defaults>
</compile_context>

<pallas_src>
import functools

import jax
import jax.numpy as jnp
from jax.experimental import pallas as pl
from jax.experimental.pallas import tpu as pltpu


# ------------------------------ VMEM budgeting ------------------------------ #

def _vmem_limit_bytes(resident_block_bytes):
    """Explicit scoped-VMEM request: 2x buffering + 50% headroom, clamped to
    [32 MiB (>= every chip's default limit), 64 MiB (smallest physical VMEM)]."""
    need = int(resident_block_bytes * 2 * 1.5)
    return max(min(need, 64 << 20), 32 << 20)


# --------------------------- fused small-graph path ------------------------- #

def _lightgcn_fused_kernel(adj_ref, ego_ref, mean_ref, layers_ref, *, n_layers):
    """Single grid step; the whole layer recurrence is unrolled in-kernel.

    adj_ref    : [N, N]            bf16 normalized adjacency
    ego_ref    : [N, Dp]           bf16 initial embeddings (seed for the carry)
    mean_ref   : [N, Dp]           f32  (sum of layers 1..L) / (L + 1)
    layers_ref : [n_layers, N, Dp] f32  propagated layers 1..L
    """
    adj = adj_ref[...]                           # bf16
    cur = ego_ref[...].astype(jnp.float32)       # f32 layer-to-layer carry
    acc = jnp.zeros_like(cur)                    # f32 running sum of layers 1..L
    for k in range(n_layers):                    # static unroll (n_layers is small & static)
        cur = jnp.dot(adj, cur.astype(jnp.bfloat16),
                      preferred_element_type=jnp.float32)
        layers_ref[k] = cur                      # lane-dense f32 store
        acc = acc + cur
    mean_ref[...] = acc * jnp.float32(1.0 / (n_layers + 1))


def _propagate_fused(adj_lp, ego_lp, n_layers, N, Dp):
    block_bytes = 2 * N * N + 2 * N * Dp + 4 * N * Dp + 4 * n_layers * N * Dp
    grid_spec = pltpu.PrefetchScalarGridSpec(
        num_scalar_prefetch=0,
        grid=(1,),
        in_specs=[
            pl.BlockSpec((N, N), lambda i: (0, 0)),
            pl.BlockSpec((N, Dp), lambda i: (0, 0)),
        ],
        out_specs=[
            pl.BlockSpec((N, Dp), lambda i: (0, 0)),
            pl.BlockSpec((n_layers, N, Dp), lambda i: (0, 0, 0)),
        ],
    )
    return pl.pallas_call(
        functools.partial(_lightgcn_fused_kernel, n_layers=n_layers),
        out_shape=(
            jax.ShapeDtypeStruct((N, Dp), jnp.float32),
            jax.ShapeDtypeStruct((n_layers, N, Dp), jnp.float32),
        ),
        grid_spec=grid_spec,
        compiler_params=pltpu.CompilerParams(
            dimension_semantics=("arbitrary",),
            vmem_limit_bytes=_vmem_limit_bytes(block_bytes),
        ),
    )(adj_lp, ego_lp)


# -------------------------- streamed large-graph path ----------------------- #

def _lightgcn_streamed_kernel(adj_ref, ego_ref, mean_ref, layer_ref, cur_ref, *,
                              n_layers):
    """One grid step == one propagation layer; the per-layer output is streamed
    so only one layer block is VMEM-resident at a time.

    adj_ref   : [N, N]     bf16 (VMEM-resident, single-buffered)
    ego_ref   : [N, Dp]    bf16 (VMEM-resident, read only at k == 0)
    mean_ref  : [N, Dp]    f32  resident accumulator (constant index map)
    layer_ref : [1, N, Dp] f32  this layer's output block (streamed per step)
    cur_ref   : [N, Dp]    f32  scratch: layer-to-layer carry
    """
    k = pl.program_id(0)

    @pl.when(k == 0)
    def _():
        cur_ref[...] = ego_ref[...].astype(jnp.float32)
        mean_ref[...] = jnp.zeros_like(mean_ref)

    # ego_embeddings = norm_adj @ ego_embeddings; carry stays f32, bf16 only at
    # the MXU input so error does not compound with depth.
    new = jnp.dot(adj_ref[...], cur_ref[...].astype(jnp.bfloat16),
                  preferred_element_type=jnp.float32)
    mean_ref[...] = mean_ref[...] + new
    cur_ref[...] = new
    layer_ref[0] = new                           # lane-dense f32 writeback

    @pl.when(k == n_layers - 1)
    def _():
        mean_ref[...] = mean_ref[...] * jnp.float32(1.0 / (n_layers + 1))


def _streamed_call(adj_lp, ego_lp, n_layers, N, Dp, *, single_buffer_resident):
    def resident(shape):
        ndim = len(shape)
        index_map = lambda k: (0,) * ndim        # constant => VMEM-resident block
        if single_buffer_resident:
            return pl.BlockSpec(shape, index_map, pipeline_mode=pl.Buffered(1))
        return pl.BlockSpec(shape, index_map)

    # adj + ego + mean + one layer block + f32 carry scratch
    block_bytes = 2 * N * N + 2 * N * Dp + 4 * N * Dp + 4 * N * Dp + 4 * N * Dp
    grid_spec = pltpu.PrefetchScalarGridSpec(
        num_scalar_prefetch=0,
        grid=(n_layers,),
        in_specs=[
            resident((N, N)),                    # bf16 adjacency
            resident((N, Dp)),                   # bf16 ego (seed only)
        ],
        out_specs=[
            resident((N, Dp)),                   # f32 mean accumulator
            pl.BlockSpec((1, N, Dp), lambda k: (k, 0, 0)),  # streamed layer k
        ],
        scratch_shapes=[pltpu.VMEM((N, Dp), jnp.float32)],
    )
    return pl.pallas_call(
        functools.partial(_lightgcn_streamed_kernel, n_layers=n_layers),
        out_shape=(
            jax.ShapeDtypeStruct((N, Dp), jnp.float32),
            jax.ShapeDtypeStruct((n_layers, N, Dp), jnp.float32),
        ),
        grid_spec=grid_spec,
        compiler_params=pltpu.CompilerParams(
            dimension_semantics=("arbitrary",),  # sequential layer recurrence
            vmem_limit_bytes=_vmem_limit_bytes(block_bytes),
        ),
    )(adj_lp, ego_lp)


def _propagate_streamed(adj_lp, ego_lp, n_layers, N, Dp):
    try:
        return _streamed_call(adj_lp, ego_lp, n_layers, N, Dp,
                              single_buffer_resident=True)
    except Exception:
        # pipeline_mode=pl.Buffered(1) not supported by this JAX build; fall
        # back to default double buffering (extra VMEM residency, same result).
        return _streamed_call(adj_lp, ego_lp, n_layers, N, Dp,
                              single_buffer_resident=False)


# ------------------------------- propagation -------------------------------- #

def lightgcn_propagate(norm_adj, ego_emb, n_layers, *, force_streamed=False):
    """LightGCN propagation in Pallas.

    Returns:
      mean_emb   : [N, D] f32  -- mean over the (n_layers + 1) embeddings
      layer_embs : [n_layers, N, D] f32 -- propagated layers 1..n_layers
                   (layer 0 is just `ego_emb`, supplied by the caller).
    """
    N, D = ego_emb.shape
    assert norm_adj.shape == (N, N)
    assert n_layers >= 1

    # Pad the embedding (lane) dim to a multiple of 128: lane-dense stores and
    # full MXU column utilization; padded columns stay exactly zero.
    Dp = max(128, ((D + 127) // 128) * 128)
    ego_lp = jnp.zeros((N, Dp), jnp.bfloat16).at[:, :D].set(
        ego_emb.astype(jnp.bfloat16))
    adj_lp = norm_adj.astype(jnp.bfloat16)

    fused_resident = 2 * N * N + 2 * N * Dp + 4 * N * Dp + 4 * n_layers * N * Dp
    use_fused = (not force_streamed) and fused_resident <= (40 << 20)

    if use_fused:
        mean_part, layers_p = _propagate_fused(adj_lp, ego_lp, n_layers, N, Dp)
    else:
        mean_part, layers_p = _propagate_streamed(adj_lp, ego_lp, n_layers, N, Dp)

    # The ego/(L+1) term is added here, exactly in f32, so it never pays the
    # bf16 round trip and the kernel never holds a VMEM-resident f32 ego.
    mean_emb = mean_part[:, :D] + ego_emb.astype(jnp.float32) * (1.0 / (n_layers + 1))
    return mean_emb, layers_p[:, :, :D]


# ----------------------- Parameter / data construction ---------------------- #

def xavier_uniform(key, shape, dtype=jnp.float32):
    fan_in, fan_out = shape[-2], shape[-1]
    limit = jnp.sqrt(6.0 / (fan_in + fan_out))
    return jax.random.uniform(key, shape, dtype, minval=-limit, maxval=limit)


def make_norm_adj(key, user_num, item_num, density=0.15):
    """Symmetric-normalized bipartite adjacency D^-1/2 A D^-1/2 (dense stand-in)."""
    N = user_num + item_num
    r = (jax.random.uniform(key, (user_num, item_num)) < density).astype(jnp.float32)
    A = jnp.zeros((N, N), jnp.float32)
    A = A.at[:user_num, user_num:].set(r)
    A = A.at[user_num:, :user_num].set(r.T)
    deg = jnp.sum(A, axis=1)
    deg = jnp.where(deg > 0, deg, 1.0)
    d_inv_sqrt = 1.0 / jnp.sqrt(deg)
    return A * d_inv_sqrt[:, None] * d_inv_sqrt[None, :]


class MyGCLEncoderPallas:
    """Deterministic JAX/Pallas re-implementation of MyGCL_Encoder.forward()."""

    def __init__(self, user_num, item_num, emb_size, n_layers, prototype_num,
                 seed=0):
        self.user_num = user_num
        self.item_num = item_num
        self.latent_size = emb_size
        self.layers = n_layers
        self.prototype_num = prototype_num

        key = jax.random.PRNGKey(seed)
        k_adj, k_u, k_i, k_pu, k_pi = jax.random.split(key, 5)
        self.norm_adj = make_norm_adj(k_adj, user_num, item_num)
        self.user_emb = xavier_uniform(k_u, (user_num, emb_size))
        self.item_emb = xavier_uniform(k_i, (item_num, emb_size))
        self.user_prototypes = xavier_uniform(k_pu, (prototype_num, emb_size))
        self.item_prototypes = xavier_uniform(k_pi, (prototype_num, emb_size))

    def forward(self):
        ego = jnp.concatenate([self.user_emb, self.item_emb], axis=0)
        mean_emb, layer_embs = lightgcn_propagate(self.norm_adj, ego, self.layers)
        user_all = mean_emb[:self.user_num]
        item_all = mean_emb[self.user_num:]
        # all_embeddings list = [ego, layer_1, ..., layer_L]; propagated layers
        # come out of the kernel already in f32 (no bf16 round trip).
        all_embeddings = [ego] + [layer_embs[k] for k in range(self.layers)]
        return (user_all, item_all, self.user_prototypes,
                self.item_prototypes, all_embeddings)


# ---------------------------------- main ----------------------------------- #

if __name__ == "__main__":
    USER_NUM = 24
    ITEM_NUM = 40          # N = 64 nodes total
    EMB_SIZE = 32
    N_LAYERS = 2
    PROTOTYPE_NUM = 8

    enc = MyGCLEncoderPallas(USER_NUM, ITEM_NUM, EMB_SIZE, N_LAYERS,
                             PROTOTYPE_NUM, seed=0)

    user_all, item_all, u_proto, i_proto, all_embs = enc.forward()
    jax.block_until_ready((user_all, item_all, u_proto, i_proto, all_embs))

    # Pure-JAX f32 reference of the propagation + mean.
    ego = jnp.concatenate([enc.user_emb, enc.item_emb], axis=0)
    ref_all = [ego]
    cur = ego
    for _ in range(N_LAYERS):
        cur = enc.norm_adj @ cur
        ref_all.append(cur)
    ref_mean = jnp.mean(jnp.stack(ref_all, axis=1), axis=1)

    assert user_all.shape == (USER_NUM, EMB_SIZE)
    assert item_all.shape == (ITEM_NUM, EMB_SIZE)
    assert u_proto.shape == (PROTOTYPE_NUM, EMB_SIZE)
    assert i_proto.shape == (PROTOTYPE_NUM, EMB_SIZE)
    assert len(all_embs) == N_LAYERS + 1
    for e in all_embs:
        assert e.dtype == jnp.float32   # no silent bf16 downgrade in the API

    # bf16 MXU inputs => bf16-level tolerance vs the f32 reference.
    got_mean = jnp.concatenate([user_all, item_all], axis=0)
    assert jnp.allclose(got_mean, ref_mean, atol=5e-2, rtol=5e-2)
    for k in range(N_LAYERS + 1):
        assert jnp.allclose(all_embs[k], ref_all[k], atol=5e-2, rtol=5e-2)

    # Consistency: the mean recomputed from the returned all_embeddings matches
    # the returned mean to f32 rounding (review correctness concern).
    recomputed = jnp.mean(jnp.stack(all_embs, axis=1), axis=1)
    assert jnp.allclose(got_mean, recomputed, atol=1e-4, rtol=1e-4)

    # Also exercise the large-graph streamed path once at the same small shapes.
    mean_s, layers_s = lightgcn_propagate(enc.norm_adj, ego, N_LAYERS,
                                          force_streamed=True)
    jax.block_until_ready((mean_s, layers_s))
    assert jnp.allclose(mean_s, ref_mean, atol=5e-2, rtol=5e-2)
    assert jnp.allclose(mean_s, got_mean, atol=1e-4, rtol=1e-4)

    print("KERNEL_OK")
</pallas_src>

<mosaic_0001>
module attributes {stable_mosaic.version = 11 : i64} {
  func.func @_lightgcn_fused_kernel(%arg0: i32, %arg1: memref<64x64xbf16, #tpu.memory_space<vmem>>, %arg2: memref<64x128xbf16, #tpu.memory_space<vmem>>, %arg3: memref<64x128xf32, #tpu.memory_space<vmem>>, %arg4: memref<2x64x128xf32, #tpu.memory_space<vmem>>) attributes {dimension_semantics = [#tpu.dimension_semantics<arbitrary>], iteration_bounds = array<i64: 1>, scalar_prefetch = 0 : i64, scratch_operands = 0 : i64, tpu.core_type = #tpu.core_type<tc>, window_params = [{pipeline_mode = #tpu.pipeline_mode<synchronous>, transform_indices = @transform_0, window_bounds = array<i64: 64, 64>}, {pipeline_mode = #tpu.pipeline_mode<synchronous>, transform_indices = @transform_1, window_bounds = array<i64: 64, 128>}, {pipeline_mode = #tpu.pipeline_mode<synchronous>, transform_indices = @transform_2, window_bounds = array<i64: 64, 128>}, {pipeline_mode = #tpu.pipeline_mode<synchronous>, transform_indices = @transform_3, window_bounds = array<i64: 2, 64, 128>}]} {
    %c0 = arith.constant 0 : index
    %c0_0 = arith.constant 0 : index
    %0 = vector.load %arg1[%c0, %c0_0] : memref<64x64xbf16, #tpu.memory_space<vmem>>, vector<64x64xbf16>
    %c0_1 = arith.constant 0 : index
    %c0_2 = arith.constant 0 : index
    %1 = vector.load %arg2[%c0_1, %c0_2] : memref<64x128xbf16, #tpu.memory_space<vmem>>, vector<64x128xbf16>
    %2 = arith.extf %1 : vector<64x128xbf16> to vector<64x128xf32>
    %cst = arith.constant 0.000000e+00 : f32
    %3 = vector.broadcast %cst : f32 to vector<64x128xf32>
    %4 = arith.truncf %2 : vector<64x128xf32> to vector<64x128xbf16>
    %cst_3 = arith.constant dense<0.000000e+00> : vector<64x128xf32>
    %5 = tpu.matmul %0, %4, %cst_3 {dimension_numbers = #tpu.dot_dimension_numbers<[1], [0], [0], [1], [0, 0, 1, 1], [], []>} : vector<64x64xbf16>, vector<64x128xbf16>, vector<64x128xf32> -> vector<64x128xf32>
    %c0_4 = arith.constant 0 : index
    %c0_5 = arith.constant 0 : index
    %c0_6 = arith.constant 0 : index
    %6 = vector.load %arg4[%c0_4, %c0_5, %c0_6] : memref<2x64x128xf32, #tpu.memory_space<vmem>>, vector<1x64x128xf32>
    %7 = vector.shape_cast %6 : vector<1x64x128xf32> to vector<64x128xf32>
    %8 = vector.shape_cast %5 : vector<64x128xf32> to vector<1x64x128xf32>
    tpu.vector_store %arg4[%c0_4, %c0_5, %c0_6], %8 {strides = array<i32>} : memref<2x64x128xf32, #tpu.memory_space<vmem>>, vector<1x64x128xf32>,
    %9 = arith.addf %3, %5 : vector<64x128xf32>
    %10 = arith.truncf %5 : vector<64x128xf32> to vector<64x128xbf16>
    %cst_7 = arith.constant dense<0.000000e+00> : vector<64x128xf32>
    %11 = tpu.matmul %0, %10, %cst_7 {dimension_numbers = #tpu.dot_dimension_numbers<[1], [0], [0], [1], [0, 0, 1, 1], [], []>} : vector<64x64xbf16>, vector<64x128xbf16>, vector<64x128xf32> -> vector<64x128xf32>
    %c1 = arith.constant 1 : index
    %c0_8 = arith.constant 0 : index
    %c0_9 = arith.constant 0 : index
    %12 = vector.load %arg4[%c1, %c0_8, %c0_9] : memref<2x64x128xf32, #tpu.memory_space<vmem>>, vector<1x64x128xf32>
    %13 = vector.shape_cast %12 : vector<1x64x128xf32> to vector<64x128xf32>
    %14 = vector.shape_cast %11 : vector<64x128xf32> to vector<1x64x128xf32>
    tpu.vector_store %arg4[%c1, %c0_8, %c0_9], %14 {strides = array<i32>} : memref<2x64x128xf32, #tpu.memory_space<vmem>>, vector<1x64x128xf32>,
    %15 = arith.addf %9, %11 : vector<64x128xf32>
    %cst_10 = arith.constant 0.333333343 : f32
    %16 = vector.broadcast %cst_10 : f32 to vector<64x128xf32>
    %17 = arith.mulf %15, %16 : vector<64x128xf32>
    %c0_11 = arith.constant 0 : index
    %c0_12 = arith.constant 0 : index
    %18 = vector.load %arg3[%c0_11, %c0_12] : memref<64x128xf32, #tpu.memory_space<vmem>>, vector<64x128xf32>
    tpu.vector_store %arg3[%c0_11, %c0_12], %17 {strides = array<i32>} : memref<64x128xf32, #tpu.memory_space<vmem>>, vector<64x128xf32>,
    return
  }
  func.func @transform_0(%arg0: i32) -> (i32, i32) {
    %c0_i32 = arith.constant 0 : i32
    %c0_i32_0 = arith.constant 0 : i32
    %c0_i32_1 = arith.constant 0 : i32
    return %c0_i32, %c0_i32_0 : i32, i32
  }
  func.func @transform_1(%arg0: i32) -> (i32, i32) {
    %c0_i32 = arith.constant 0 : i32
    %c0_i32_0 = arith.constant 0 : i32
    %c0_i32_1 = arith.constant 0 : i32
    return %c0_i32, %c0_i32_0 : i32, i32
  }
  func.func @transform_2(%arg0: i32) -> (i32, i32) {
    %c0_i32 = arith.constant 0 : i32
    %c0_i32_0 = arith.constant 0 : i32
    %c0_i32_1 = arith.constant 0 : i32
    return %c0_i32, %c0_i32_0 : i32, i32
  }
  func.func @transform_3(%arg0: i32) -> (i32, i32, i32) {
    %c0_i32 = arith.constant 0 : i32
    %c0_i32_0 = arith.constant 0 : i32
    %c0_i32_1 = arith.constant 0 : i32
    %c0_i32_2 = arith.constant 0 : i32
    return %c0_i32, %c0_i32_0, %c0_i32_1 : i32, i32, i32
  }
}

</mosaic_0001>

<bundles_post_ra>
// kernel: tpu_custom_call.1
= control target key start
LH: loop header
LB: loop body
LE: loop exit
PB: predicated region body
PF: predicated region fallthrough
CT: control target
= control target key end

     0   :  { %9 = vsyncpa [#allocation3], 0  ;;  %s601_s0 = inlined_call_operand.hbm [shape: bf16[64,64], index: 0, kind: input, shape index: {}]   ;;  %s602_s1 = inlined_call_operand.hbm [shape: bf16[64,128], index: 1, kind: input, shape index: {}]   ;;  %s603_s2 = inlined_call_operand.hbm [shape: f32[64,128], index: 2, kind: output, shape index: {0}]   ;;  %s604_s3 = inlined_call_operand.hbm [shape: f32[2,64,128], index: 3, kind: output, shape index: {1}]  }
   0x1   :  { %10 = vsyncpa [#allocation6], 0 }
   0x2   :  { %11 = vsyncpa [#allocation4], 0 }
   0x3   :  { %12 = vsyncpa [#allocation9], 0  ;;  %s510_s12 = smov [#allocation2]   ;;  %s414_s16 = scalar_lea.hbm %s601_s0, 512 }
   0x4   :  { %s18_s13 = sshll.u32 %s510_s12, 4  ;;  %p415_p0 = scmp.ne.s32.totalorder %s601_s0, %s414_s16  ;;  %s19_s13 = int_to_ptr.vmem [resolvable:$true] %s18_s13 }
   0x5   :  { %p418_p1 = scmp.lt.u32.totalorder %s414_s16, %s601_s0 }
   0x7   :  { %p420_p2 = pnand %p418_p1, %p415_p0 }
   0x9   :  { %423 = shalt.err (!%p420_p2)
}
   0xa   :  { %s424_s21 = scalar_lea.vmem %s19_s13, 512  ;;  %p429_p4 = scmp.lt.s32.totalorder %s19_s13, %s19_s13 }
   0xb   :  { %p425_p3 = scmp.ne.s32.totalorder %s19_s13, %s424_s21  ;;  %p430_p5 = scmp.lt.s32.totalorder %s424_s21, %s424_s21 }
   0xd   :  { %p431_p6 = por %p430_p5, %p429_p4 }
   0xf   :  { %p432_p7 = pnand %p431_p6, %p425_p3 }
  0x11   :  { %435 = shalt.err (!%p432_p7)
}
  0x12   :  { %s511_s22 = smov 64   ;;  %s512_s23 = smov 4  }
  0x13   :  { %24 = dma.hbm_to_vmem [thread:$0]  %s601_s0, 512, %s19_s13, [#allocation3], %s511_s22, %s511_s22, %s512_s23  }
  0x14   :  { %s513_s26 = smov [#allocation5]   ;;  %s436_s30 = scalar_lea.hbm %s602_s1, 512 }
  0x15   :  { %s30_s27 = sshll.u32 %s513_s26, 4  ;;  %p437_p8 = scmp.ne.s32.totalorder %s602_s1, %s436_s30  ;;  %s31_s27 = int_to_ptr.vmem [resolvable:$true] %s30_s27 }
  0x16   :  { %p440_p9 = scmp.lt.u32.totalorder %s436_s30, %s602_s1 }
  0x18   :  { %p442_p10 = pnand %p440_p9, %p437_p8 }
  0x1a   :  { %445 = shalt.err (!%p442_p10)
}
  0x1b   :  { %s446_s8 = scalar_lea.vmem %s31_s27, 512  ;;  %p451_p12 = scmp.lt.s32.totalorder %s31_s27, %s31_s27 }
  0x1c   :  { %p447_p11 = scmp.ne.s32.totalorder %s31_s27, %s446_s8  ;;  %p452_p13 = scmp.lt.s32.totalorder %s446_s8, %s446_s8 }
  0x1e   :  { %p453_p0 = por %p452_p13, %p451_p12 }
  0x20   :  { %p454_p1 = pnand %p453_p0, %p447_p11 }
  0x22   :  { %457 = shalt.err (!%p454_p1)
}
  0x23   :  { %36 = dma.hbm_to_vmem [thread:$0]  %s602_s1, 512, %s31_s27, [#allocation6], %s511_s22, %s511_s22, %s512_s23  }
  0x24   :  { %502 = dma.done.wait [#allocation3], 512  }
  0x25   :  { %503 = vsyncadd [#allocation3], 4294966784 }
  0x26   :  { %504 = dma.done.wait [#allocation6], 512  }
  0x27   :  { %505 = vsyncadd [#allocation6], 4294966784  ;;  %v406_v0 = vld [vmem:[#allocation5] sm:$0xff]   ;;  %v407_v1 = vld [vmem:[#allocation5 + $0x8] sm:$0xff]   ;;  %vm104_vm0 = vcmask 523264   ;;  %s514_s1 = smov [#allocation8]  }
  0x28   :  { %366 = vmatprep.subr.bf16.mxu0 %v406_v0  ;;  %v408_v2 = vld [vmem:[#allocation5 + $0x10] sm:$0xff]   ;;  %v410_v3 = vld [vmem:[#allocation2] sm:$0xff]   ;;  %v409_v4 = vld [vmem:[#allocation5 + $0x18] sm:$0xff]   ;;  %s317_s10 = sshll.u32 %s514_s1, 4  ;;  %s515_s11 = smov [#allocation7]   ;;  %s570_s10 = int_to_ptr.vmem [resolvable:$true] %s317_s10 }
  0x29   :  { %367 = vmatpush3.bf16.msra.mxu0 %v406_v0  ;;  %374 = vmatprep.mubr.msk.bf16.mxu0 %vm104_vm0, %v410_v3  ;;  %v411_v5 = vld [vmem:[#allocation2 + $0x8] sm:$0xff]   ;;  %v412_v6 = vld [vmem:[#allocation2 + $0x10] sm:$0xff]   ;;  %v413_v7 = vld [vmem:[#allocation2 + $0x18] sm:$0xff]   ;;  %s305_s12 = sshll.u32 %s515_s11, 4  ;;  %s458_s13 = scalar_lea.vmem %s570_s10, 2048  ;;  %s306_s12 = int_to_ptr.vmem [resolvable:$true] %s305_s12 }
  0x2a   :  { %368 = vmatprep.subr.bf16.mxu0 %v407_v1  ;;  %390 = vmatprep.mubr.msk.bf16.mxu1 %vm104_vm0, %v410_v3  ;;  %p459_p2 = scmp.ne.s32.totalorder %s570_s10, %s458_s13  ;;  %p463_p3 = scmp.lt.s32.totalorder %s570_s10, %s570_s10 }
  0x2b   :  { %p464_p4 = scmp.lt.s32.totalorder %s458_s13, %s458_s13 }
  0x2d   :  { %369 = vmatpush3.bf16.msra.mxu0 %v407_v1  ;;  %p465_p5 = por %p464_p4, %p463_p3 }
  0x2e   :  { %370 = vmatprep.subr.bf16.mxu0 %v408_v2 }
  0x2f   :  { %p466_p6 = pnand %p465_p5, %p459_p2 }
  0x31   :  { %371 = vmatpush3.bf16.msra.mxu0 %v408_v2 }
  0x32   :  { %372 = vmatprep.subr.bf16.mxu0 %v409_v4 }
  0x35   :  { %373 = vmatpush3.bf16.msra.mxu0 %v409_v4 }
  0x38   :  { %375 = vmatmul.mubr.msk.bf16.vlgmr.msra.gmra.mrb[0].mxu0 %vm104_vm0, %v411_v5 }
  0x39   :  { %378 = vmatprep.mubr.msk.bf16.mxu0 %vm104_vm0, %v412_v6 }
  0x40   :  { %379 = vmatmul.mubr.msk.bf16.gmra.mrb[4].mxu0 %vm104_vm0, %v413_v7 }
 0x10b   :  { %v376_v8 = vpop.f32.mrb[0].mxu0 }
 0x10c   :  { %184 = vst [vmem:[#allocation8 + $0x10] sm:$0xff] %v376_v8  ;;  %v151_v9 = vpop.f32.mrb[1].mxu0 }
 0x10d   :  { %182 = vst [vmem:[#allocation8] sm:$0xff] %v151_v9  ;;  %v377_v10 = vpop.f32.mrb[2].mxu0 }
 0x10e   :  { %185 = vst [vmem:[#allocation8 + $0x18] sm:$0xff] %v377_v10  ;;  %v199_v11 = vpack.c.bf16 %v377_v10, %v376_v8  ;;  %v154_v12 = vpop.f32.mrb[3].mxu0 }
 0x10f   :  { %183 = vst [vmem:[#allocation8 + $0x8] sm:$0xff] %v154_v12  ;;  %v198_v13 = vpack.c.bf16 %v154_v12, %v151_v9 }
 0x111   :  { %382 = vmatprep.subr.bf16.mxu1 %v198_v13 }
 0x112   :  { %383 = vmatpush3.bf16.msra.mxu1 %v198_v13 }
 0x113   :  { %v380_v14 = vpop.f32.mrb[4].mxu0  ;;  %384 = vmatprep.subr.bf16.mxu1 %v199_v11 }
 0x114   :  { %188 = vst [vmem:[#allocation8 + $0x30] sm:$0xff] %v380_v14  ;;  %v167_v15 = vpop.f32.mrb[5].mxu0 }
 0x115   :  { %186 = vst [vmem:[#allocation8 + $0x20] sm:$0xff] %v167_v15  ;;  %v381_v16 = vpop.f32.mrb[6].mxu0 }
 0x116   :  { %189 = vst [vmem:[#allocation8 + $0x38] sm:$0xff] %v381_v16  ;;  %v201_v17 = vpack.c.bf16 %v381_v16, %v380_v14  ;;  %v170_v18 = vpop.f32.mrb[7].mxu0  ;;  %385 = vmatpush3.bf16.msra.mxu1 %v199_v11 }
 0x117   :  { %187 = vst [vmem:[#allocation8 + $0x28] sm:$0xff] %v170_v18  ;;  %v200_v19 = vpack.c.bf16 %v170_v18, %v167_v15 }
 0x119   :  { %386 = vmatprep.subr.bf16.mxu1 %v200_v19 }
 0x11a   :  { %387 = vmatpush3.bf16.msra.mxu1 %v200_v19 }
 0x11b   :  { %388 = vmatprep.subr.bf16.mxu1 %v201_v17 }
 0x11e   :  { %389 = vmatpush3.bf16.msra.mxu1 %v201_v17 }
 0x121   :  { %391 = vmatmul.mubr.msk.bf16.vlgmr.msra.gmra.mrb[0].mxu1 %vm104_vm0, %v411_v5 }
 0x122   :  { %394 = vmatprep.mubr.msk.bf16.mxu1 %vm104_vm0, %v412_v6 }
 0x129   :  { %395 = vmatmul.mubr.msk.bf16.gmra.mrb[4].mxu1 %vm104_vm0, %v413_v7 }
 0x1f4   :  { %v392_v20 = vpop.f32.mrb[0].mxu1 }
 0x1f5   :  { %270 = vst [vmem:[#allocation8 + $0x50] sm:$0xff] %v392_v20  ;;  %v278_v21 = vadd.f32 %v392_v20, %v376_v8  ;;  %v236_v22 = vpop.f32.mrb[1].mxu1 }
 0x1f6   :  { %268 = vst [vmem:[#allocation8 + $0x40] sm:$0xff] %v236_v22  ;;  %v276_v23 = vadd.f32 %v236_v22, %v151_v9  ;;  %v393_v24 = vpop.f32.mrb[2].mxu1 }
 0x1f7   :  { %v286_v25 = vmul.f32 0.33333334, %v278_v21  ;;  %271 = vst [vmem:[#allocation8 + $0x58] sm:$0xff] %v393_v24  ;;  %v279_v26 = vadd.f32 %v393_v24, %v377_v10  ;;  %v239_v27 = vpop.f32.mrb[3].mxu1 }
 0x1f8   :  { %v284_v28 = vmul.f32 0.33333334, %v276_v23  ;;  %269 = vst [vmem:[#allocation8 + $0x48] sm:$0xff] %v239_v27  ;;  %v277_v29 = vadd.f32 %v239_v27, %v154_v12 }
 0x1f9   :  { %294 = vst [vmem:[#allocation7 + $0x10] sm:$0xff] %v286_v25  ;;  %v287_v30 = vmul.f32 0.33333334, %v279_v26 }
 0x1fa   :  { %292 = vst [vmem:[#allocation7] sm:$0xff] %v284_v28  ;;  %v285_v31 = vmul.f32 0.33333334, %v277_v29 }
 0x1fb   :  { %295 = vst [vmem:[#allocation7 + $0x18] sm:$0xff] %v287_v30 }
 0x1fc   :  { %293 = vst [vmem:[#allocation7 + $0x8] sm:$0xff] %v285_v31  ;;  %v396_v32 = vpop.f32.mrb[4].mxu1 }
 0x1fd   :  { %274 = vst [vmem:[#allocation8 + $0x70] sm:$0xff] %v396_v32  ;;  %v282_v33 = vadd.f32 %v396_v32, %v380_v14  ;;  %v252_v34 = vpop.f32.mrb[5].mxu1 }
 0x1fe   :  { %272 = vst [vmem:[#allocation8 + $0x60] sm:$0xff] %v252_v34  ;;  %v280_v35 = vadd.f32 %v252_v34, %v167_v15  ;;  %v397_v36 = vpop.f32.mrb[6].mxu1 }
 0x1ff   :  { %v290_v37 = vmul.f32 0.33333334, %v282_v33  ;;  %275 = vst [vmem:[#allocation8 + $0x78] sm:$0xff] %v397_v36  ;;  %v283_v38 = vadd.f32 %v397_v36, %v381_v16  ;;  %v255_v39 = vpop.f32.mrb[7].mxu1 }
 0x200   :  { %v288_v40 = vmul.f32 0.33333334, %v280_v35  ;;  %273 = vst [vmem:[#allocation8 + $0x68] sm:$0xff] %v255_v39  ;;  %v281_v41 = vadd.f32 %v255_v39, %v170_v18 }
 0x201   :  { %298 = vst [vmem:[#allocation7 + $0x30] sm:$0xff] %v290_v37  ;;  %v291_v42 = vmul.f32 0.33333334, %v283_v38 }
 0x202   :  { %469 = shalt.err (!%p466_p6)
}
 0x203   :  { %s470_s16 = scalar_lea.hbm %s604_s3, 2048 }
 0x204   :  { %p471_p7 = scmp.ne.s32.totalorder %s604_s3, %s470_s16  ;;  %p474_p8 = scmp.lt.u32.totalorder %s470_s16, %s604_s3 }
 0x206   :  { %p476_p9 = pnand %p474_p8, %p471_p7 }
 0x208   :  { %479 = shalt.err (!%p476_p9)
}
 0x209   :  { %s516_s21 = smov 128   ;;  %s517_s22 = smov 8   ;;  %296 = vst [vmem:[#allocation7 + $0x20] sm:$0xff] %v288_v40  ;;  %v289_v43 = vmul.f32 0.33333334, %v281_v41  ;;  %299 = vst [vmem:[#allocation7 + $0x38] sm:$0xff] %v291_v42 }
 0x20a   :  { %323 = dma.vmem_to_hbm [thread:$0]  %s570_s10, 2048, %s604_s3, [#allocation9], %s516_s21, %s516_s21, %s517_s22  }
 0x20b   :  { %297 = vst [vmem:[#allocation7 + $0x28] sm:$0xff] %v289_v43  ;;  %s480_s25 = scalar_lea.vmem %s306_s12, 1024  ;;  %p485_p11 = scmp.lt.s32.totalorder %s306_s12, %s306_s12 }
 0x20c   :  { %p481_p10 = scmp.ne.s32.totalorder %s306_s12, %s480_s25  ;;  %p486_p12 = scmp.lt.s32.totalorder %s480_s25, %s480_s25 }
 0x20e   :  { %p487_p13 = por %p486_p12, %p485_p11 }
 0x210   :  { %p488_p0 = pnand %p487_p13, %p481_p10 }
 0x212   :  { %491 = shalt.err (!%p488_p0)
}
 0x213   :  { %s492_s28 = scalar_lea.hbm %s603_s2, 1024 }
 0x214   :  { %p493_p1 = scmp.ne.s32.totalorder %s603_s2, %s492_s28  ;;  %p496_p2 = scmp.lt.u32.totalorder %s492_s28, %s603_s2 }
 0x216   :  { %p498_p3 = pnand %p496_p2, %p493_p1 }
 0x218   :  { %501 = shalt.err (!%p498_p3)
}
 0x219   :  { %311 = dma.vmem_to_hbm [thread:$0]  %s306_s12, 1024, %s603_s2, [#allocation4], %s516_s21, %s516_s21, %s517_s22  }
 0x21a   :  { %506 = dma.done.wait [#allocation4], 1024  }
 0x21b   :  { %507 = vsyncadd [#allocation4], 4294966272 }
 0x21c   :  { %508 = dma.done.wait [#allocation9], 2048  }
 0x21d   :  { %509 = vsyncadd [#allocation9], 4294965248 }
 0x21e   :  { %330 = vsyncpa [#allocation3], 1 }
 0x21f   :  { %331 = vsyncpa [#allocation6], 1 }
 0x220   :  { %332 = vsyncpa [#allocation4], 1 }
 0x221   :  { %333 = vsyncpa [#allocation9], 1 }

</bundles_post_ra>
